<compile_context>
chip_gen: v6e
topology: v6e:2x2x1
jax: 0.10.0
libtpu: 0.0.40
codegen_flags: <defaults>
</compile_context>

<pallas_src>
import functools

import jax
import jax.numpy as jnp
from jax.experimental import pallas as pl
from jax.experimental.pallas import tpu as pltpu


# ----------------------------------------------------------------------------
# Shape helpers
# ----------------------------------------------------------------------------
def _ffn_hidden_dim(input_dim: int, multiple_of: int, ffn_dim_multiplier=None) -> int:
    hidden_dim = 4 * input_dim
    hidden_dim = int(2 * hidden_dim / 3)
    if ffn_dim_multiplier is not None:
        hidden_dim = int(hidden_dim * ffn_dim_multiplier)
    hidden_dim = multiple_of * ((hidden_dim + multiple_of - 1) // multiple_of)
    return hidden_dim


def _round_up(x: int, m: int) -> int:
    return ((x + m - 1) // m) * m


def _pick_tile(total: int, desired: int, quantum: int) -> int:
    """Largest multiple of `quantum` <= desired that divides `total` (guarded)."""
    if total <= quantum or total % quantum != 0:
        return total
    t = min(desired, total)
    t = max(quantum, (t // quantum) * quantum)
    while t > quantum and total % t != 0:
        t -= quantum
    if total % t != 0:
        return total
    return t


def _device_defaults():
    """Per-generation tile/VMEM defaults (conservative fallback)."""
    kind = ""
    try:
        kind = jax.devices()[0].device_kind.lower()
    except Exception:  # pragma: no cover
        pass
    if "v7" in kind:
        # 64 MiB physical VMEM per TC: stay well under it; TH=256 matches MXU.
        return dict(token_tile=512, hidden_tile=256, vmem_limit_bytes=56 * 1024 * 1024)
    if "v6" in kind:
        # 128 MiB VMEM, ridge ~650 flops/byte: big token tiles pay off.
        return dict(token_tile=1024, hidden_tile=512, vmem_limit_bytes=100 * 1024 * 1024)
    # v5e / unknown: ridge ~240 flops/byte, 128 MiB VMEM.
    return dict(token_tile=256, hidden_tile=512, vmem_limit_bytes=64 * 1024 * 1024)


# ----------------------------------------------------------------------------
# One-time weight preparation (NOT inside the per-call jit)
# ----------------------------------------------------------------------------
def prepare_ffn_weights(w1, w2, w3, *, hidden_tile=512, compute_dtype=jnp.bfloat16):
    """w1, w3: (H, D); w2: (D, H)  (nn.Linear layout).

    Returns:
      w13_tiled: (K, D, 2*TH) bf16, tile-major & contiguous per hidden tile:
                 [..., :TH] = w1^T columns of tile k, [..., TH:] = w3^T columns.
      w2t      : (H, D)       bf16 (rows of a hidden tile are contiguous).
    """
    H, D = w1.shape
    TH = _pick_tile(H, hidden_tile, 128)
    K = H // TH

    w1t = jnp.asarray(w1).T.astype(compute_dtype)   # (D, H)
    w3t = jnp.asarray(w3).T.astype(compute_dtype)   # (D, H)
    w1_tiles = w1t.reshape(D, K, TH).transpose(1, 0, 2)   # (K, D, TH)
    w3_tiles = w3t.reshape(D, K, TH).transpose(1, 0, 2)   # (K, D, TH)
    w13_tiled = jnp.concatenate([w1_tiles, w3_tiles], axis=-1)  # (K, D, 2*TH)

    w2t = jnp.asarray(w2).T.astype(compute_dtype)    # (H, D)
    return w13_tiled, w2t


# ----------------------------------------------------------------------------
# Kernels
# ----------------------------------------------------------------------------
def _ffn_step(x_ref, w13_ref, w2t_ref, acc_ref):
    """One (token tile, hidden tile) step accumulating into acc_ref (f32)."""
    th = w2t_ref.shape[0]
    x = x_ref[...].astype(w13_ref.dtype)            # cast to bf16 in-kernel
    # Fused gate/up projection: (TM, D) x (D, 2*TH) -> (TM, 2*TH), f32 acc.
    h13 = jnp.dot(x, w13_ref[...], preferred_element_type=jnp.float32)
    h1 = h13[:, :th]
    h3 = h13[:, th:]
    h = (h1 * jax.nn.sigmoid(h1)) * h3              # SiLU(gate) * up, f32 VPU/EUP
    # Partial down-projection of this hidden tile.
    acc_ref[...] += jnp.dot(h.astype(w2t_ref.dtype), w2t_ref[...],
                            preferred_element_type=jnp.float32)


def _ffn_kernel_f32_out(x_ref, w13_ref, w2t_ref, o_ref):
    """Output is f32: accumulate directly into the resident output block."""
    @pl.when(pl.program_id(1) == 0)
    def _():
        o_ref[...] = jnp.zeros_like(o_ref)

    _ffn_step(x_ref, w13_ref, w2t_ref, o_ref)


def _ffn_kernel_scratch(x_ref, w13_ref, w2t_ref, o_ref, acc_ref):
    """Non-f32 output: f32 scratch accumulator, cast on the last hidden tile."""
    k = pl.program_id(1)

    @pl.when(k == 0)
    def _():
        acc_ref[...] = jnp.zeros_like(acc_ref)

    _ffn_step(x_ref, w13_ref, w2t_ref, acc_ref)

    @pl.when(k == pl.num_programs(1) - 1)
    def _():
        o_ref[...] = acc_ref[...].astype(o_ref.dtype)


# ----------------------------------------------------------------------------
# Forward wrapper
# ----------------------------------------------------------------------------
def _fit_token_tile(TM, D, TH, x_itemsize, out_itemsize, wgt_itemsize,
                    acc_needed, vmem_limit_bytes):
    """Shrink TM until the double-buffered working set fits the VMEM budget."""
    weight_bytes = 2 * (2 * D * TH + TH * D) * wgt_itemsize   # 2 bufs x (w13 + w2t)

    def working_set(tm):
        b = weight_bytes
        b += 2 * tm * D * x_itemsize      # x double buffer
        b += 2 * tm * D * out_itemsize    # out double buffer
        if acc_needed:
            b += tm * D * 4               # f32 scratch accumulator
        return b

    budget = int(vmem_limit_bytes * 0.9)
    while TM > 16 and working_set(TM) > budget:
        TM = max(16, _round_up(TM // 2, 16))
    return TM


@functools.partial(jax.jit, static_argnames=("token_tile", "vmem_limit_bytes"))
def feed_forward(x, w13_tiled, w2t, *, token_tile=256,
                 vmem_limit_bytes=64 * 1024 * 1024):
    """x: (B, S, D); w13_tiled: (K, D, 2*TH); w2t: (H, D). Returns (B, S, D)."""
    B, S, D = x.shape
    K, _, two_th = w13_tiled.shape
    TH = two_th // 2
    M = B * S
    out_dtype = x.dtype

    # Token tiling: multiple of 16 (bf16 sublane packing); no wrapper pad/cast.
    TM = min(token_tile, _round_up(M, 16))
    # Keep both TensorCores busy (megacore / v7x) when M allows.
    if M >= 32 and -(-M // TM) < 2:
        TM = _round_up(-(-M // 2), 16)
    TM = _fit_token_tile(TM, D, TH,
                         x.dtype.itemsize, jnp.dtype(out_dtype).itemsize,
                         w13_tiled.dtype.itemsize,
                         acc_needed=(out_dtype != jnp.float32),
                         vmem_limit_bytes=vmem_limit_bytes)

    x2d = x.reshape(M, D)                      # no cast, no pad
    num_m = -(-M // TM)
    grid = (num_m, K)

    in_specs = [
        pl.BlockSpec((TM, D), lambda m, k: (m, 0)),            # x tile
        pl.BlockSpec((None, D, 2 * TH), lambda m, k: (k, 0, 0)),  # fused w1/w3 tile
        pl.BlockSpec((TH, D), lambda m, k: (k, 0)),             # w2^T tile
    ]
    out_specs = pl.BlockSpec((TM, D), lambda m, k: (m, 0))

    if out_dtype == jnp.float32:
        kernel = _ffn_kernel_f32_out
        scratch_shapes = []
    else:
        kernel = _ffn_kernel_scratch
        scratch_shapes = [pltpu.VMEM((TM, D), jnp.float32)]

    out2d = pl.pallas_call(
        kernel,
        out_shape=jax.ShapeDtypeStruct((M, D), out_dtype),
        grid_spec=pltpu.PrefetchScalarGridSpec(
            num_scalar_prefetch=0,
            grid=grid,
            in_specs=in_specs,
            out_specs=out_specs,
            scratch_shapes=scratch_shapes,
        ),
        compiler_params=pltpu.CompilerParams(
            # Token axis shards across TensorCores; hidden axis is a reduction.
            dimension_semantics=("parallel", "arbitrary"),
            vmem_limit_bytes=vmem_limit_bytes,
        ),
    )(x2d, w13_tiled, w2t)

    return out2d.reshape(B, S, D)


# ----------------------------------------------------------------------------
# Pure-JAX reference (matched bf16 matmul inputs / f32 accumulation)
# ----------------------------------------------------------------------------
def _reference(x, w1, w2, w3, compute_dtype=jnp.bfloat16):
    cd = compute_dtype
    xc = x.astype(cd)
    h1 = jnp.dot(xc, w1.T.astype(cd), preferred_element_type=jnp.float32)
    h3 = jnp.dot(xc, w3.T.astype(cd), preferred_element_type=jnp.float32)
    h = (h1 * jax.nn.sigmoid(h1)) * h3
    out = jnp.dot(h.astype(cd), w2.T.astype(cd), preferred_element_type=jnp.float32)
    return out.astype(x.dtype)


if __name__ == "__main__":
    # Small, TPU-friendly shapes consistent with the module:
    # input_dim=128, multiple_of=256 -> hidden_dim = 768.
    input_dim = 128
    multiple_of = 256
    hidden_dim = _ffn_hidden_dim(input_dim, multiple_of)   # 768

    B, S = 2, 8
    key = jax.random.PRNGKey(0)
    kx, k1, k2, k3 = jax.random.split(key, 4)

    x = jax.random.normal(kx, (B, S, input_dim), dtype=jnp.float32)
    # PyTorch nn.Linear layout: (out_features, in_features).
    w1 = jax.random.normal(k1, (hidden_dim, input_dim), dtype=jnp.float32) * 0.02
    w2 = jax.random.normal(k2, (input_dim, hidden_dim), dtype=jnp.float32) * 0.02
    w3 = jax.random.normal(k3, (hidden_dim, input_dim), dtype=jnp.float32) * 0.02

    cfg = _device_defaults()
    # One-time weight layout plumbing (outside the per-call jit).
    w13_tiled, w2t = prepare_ffn_weights(w1, w2, w3, hidden_tile=cfg["hidden_tile"])

    out = feed_forward(x, w13_tiled, w2t,
                       token_tile=cfg["token_tile"],
                       vmem_limit_bytes=cfg["vmem_limit_bytes"])
    out = jax.block_until_ready(out)

    ref = _reference(x, w1, w2, w3)
    assert out.shape == (B, S, input_dim)
    assert jnp.allclose(out, ref, atol=2e-3, rtol=2e-3), "mismatch vs reference"

    print("KERNEL_OK")
</pallas_src>

<mosaic_0001>
module attributes {stable_mosaic.version = 11 : i64} {
  func.func @_ffn_kernel_f32_out(%arg0: i32, %arg1: i32, %arg2: memref<16x128xf32, #tpu.memory_space<vmem>>, %arg3: memref<1x128x1024xbf16, #tpu.memory_space<vmem>>, %arg4: memref<512x128xbf16, #tpu.memory_space<vmem>>, %arg5: memref<16x128xf32, #tpu.memory_space<vmem>>) attributes {dimension_semantics = [#tpu.dimension_semantics<parallel>, #tpu.dimension_semantics<arbitrary>], iteration_bounds = array<i64: 1, 1>, scalar_prefetch = 0 : i64, scratch_operands = 0 : i64, tpu.core_type = #tpu.core_type<tc>, window_params = [{transform_indices = @transform_0, window_bounds = array<i64: 16, 128>}, {transform_indices = @transform_1, window_bounds = array<i64: 1, 128, 1024>}, {transform_indices = @transform_2, window_bounds = array<i64: 512, 128>}, {transform_indices = @transform_3, window_bounds = array<i64: 16, 128>}]} {
    %c0_i32 = arith.constant 0 : i32
    %0 = arith.cmpi eq, %arg1, %c0_i32 : i32
    %1 = arith.extui %0 : i1 to i32
    %c0_i32_0 = arith.constant 0 : i32
    %2 = arith.cmpi ne, %1, %c0_i32_0 : i32
    scf.if %2 {
      %cst_13 = arith.constant 0.000000e+00 : f32
      %23 = vector.broadcast %cst_13 : f32 to vector<16x128xf32>
      %c0_14 = arith.constant 0 : index
      %c0_15 = arith.constant 0 : index
      %24 = vector.load %arg5[%c0_14, %c0_15] : memref<16x128xf32, #tpu.memory_space<vmem>>, vector<16x128xf32>
      tpu.vector_store %arg5[%c0_14, %c0_15], %23 {strides = array<i32>} : memref<16x128xf32, #tpu.memory_space<vmem>>, vector<16x128xf32>,
    } else {
    }
    %c0 = arith.constant 0 : index
    %c0_1 = arith.constant 0 : index
    %3 = vector.load %arg2[%c0, %c0_1] : memref<16x128xf32, #tpu.memory_space<vmem>>, vector<16x128xf32>
    %4 = arith.truncf %3 : vector<16x128xf32> to vector<16x128xbf16>
    %c0_2 = arith.constant 0 : index
    %c0_3 = arith.constant 0 : index
    %c0_4 = arith.constant 0 : index
    %5 = vector.load %arg3[%c0_2, %c0_3, %c0_4] : memref<1x128x1024xbf16, #tpu.memory_space<vmem>>, vector<1x128x1024xbf16>
    %6 = vector.shape_cast %5 : vector<1x128x1024xbf16> to vector<128x1024xbf16>
    %cst = arith.constant dense<0.000000e+00> : vector<16x1024xf32>
    %7 = tpu.matmul %4, %6, %cst {dimension_numbers = #tpu.dot_dimension_numbers<[1], [0], [0], [1], [0, 0, 1, 1], [], []>} : vector<16x128xbf16>, vector<128x1024xbf16>, vector<16x1024xf32> -> vector<16x1024xf32>
    %8 = vector.extract_strided_slice %7 {offsets = [0, 0], sizes = [16, 512], strides = [1, 1]} : vector<16x1024xf32> to vector<16x512xf32>
    %9 = vector.extract_strided_slice %7 {offsets = [0, 512], sizes = [16, 512], strides = [1, 1]} : vector<16x1024xf32> to vector<16x512xf32>
    %10 = arith.negf %8 : vector<16x512xf32>
    %11 = math.exp %10 : vector<16x512xf32>
    %cst_5 = arith.constant 1.000000e+00 : f32
    %12 = vector.broadcast %cst_5 : f32 to vector<16x512xf32>
    %13 = arith.addf %12, %11 : vector<16x512xf32>
    %14 = arith.divf %12, %13 : vector<16x512xf32>
    %15 = arith.mulf %8, %14 : vector<16x512xf32>
    %16 = arith.mulf %15, %9 : vector<16x512xf32>
    %c0_6 = arith.constant 0 : index
    %c0_7 = arith.constant 0 : index
    %17 = vector.load %arg5[%c0_6, %c0_7] : memref<16x128xf32, #tpu.memory_space<vmem>>, vector<16x128xf32>
    %18 = arith.truncf %16 : vector<16x512xf32> to vector<16x512xbf16>
    %c0_8 = arith.constant 0 : index
    %c0_9 = arith.constant 0 : index
    %19 = vector.load %arg4[%c0_8, %c0_9] : memref<512x128xbf16, #tpu.memory_space<vmem>>, vector<512x128xbf16>
    %cst_10 = arith.constant dense<0.000000e+00> : vector<16x128xf32>
    %20 = tpu.matmul %18, %19, %cst_10 {dimension_numbers = #tpu.dot_dimension_numbers<[1], [0], [0], [1], [0, 0, 1, 1], [], []>} : vector<16x512xbf16>, vector<512x128xbf16>, vector<16x128xf32> -> vector<16x128xf32>
    %21 = arith.addf %17, %20 : vector<16x128xf32>
    %c0_11 = arith.constant 0 : index
    %c0_12 = arith.constant 0 : index
    %22 = vector.load %arg5[%c0_11, %c0_12] : memref<16x128xf32, #tpu.memory_space<vmem>>, vector<16x128xf32>
    tpu.vector_store %arg5[%c0_11, %c0_12], %21 {strides = array<i32>} : memref<16x128xf32, #tpu.memory_space<vmem>>, vector<16x128xf32>,
    return
  }
  func.func @transform_0(%arg0: i32, %arg1: i32) -> (i32, i32) {
    %c0_i32 = arith.constant 0 : i32
    %c0_i32_0 = arith.constant 0 : i32
    return %arg0, %c0_i32 : i32, i32
  }
  func.func @transform_1(%arg0: i32, %arg1: i32) -> (i32, i32, i32) {
    %c0_i32 = arith.constant 0 : i32
    %c0_i32_0 = arith.constant 0 : i32
    %c0_i32_1 = arith.constant 0 : i32
    return %arg1, %c0_i32, %c0_i32_0 : i32, i32, i32
  }
  func.func @transform_2(%arg0: i32, %arg1: i32) -> (i32, i32) {
    %c0_i32 = arith.constant 0 : i32
    %c0_i32_0 = arith.constant 0 : i32
    return %arg1, %c0_i32 : i32, i32
  }
  func.func @transform_3(%arg0: i32, %arg1: i32) -> (i32, i32) {
    %c0_i32 = arith.constant 0 : i32
    %c0_i32_0 = arith.constant 0 : i32
    return %arg0, %c0_i32 : i32, i32
  }
}

</mosaic_0001>

<bundles_post_ra>
// kernel: feed_forward.1
= control target key start
LH: loop header
LB: loop body
LE: loop exit
PB: predicated region body
PF: predicated region fallthrough
CT: control target
= control target key end

     0   :  { %8 = vsyncpa [#allocation3], 0  ;;  %s1429_s0 = inlined_call_operand.hbm [shape: f32[16,128], index: 0, kind: input, shape index: {}]   ;;  %s1430_s1 = inlined_call_operand.hbm [shape: bf16[1,128,1024], index: 1, kind: input, shape index: {}]   ;;  %s1431_s2 = inlined_call_operand.hbm [shape: bf16[512,128], index: 2, kind: input, shape index: {}]   ;;  %s1432_s3 = inlined_call_operand.hbm [shape: f32[16,128], index: 3, kind: output, shape index: {}]  }
   0x1   :  { %9 = vsyncpa [#allocation6], 0 }
   0x2   :  { %10 = vsyncpa [#allocation4], 0  ;;  %s1362_s12 = smov [#allocation5]  }
   0x3   :  { %s28_s13 = sshll.u32 %s1362_s12, 4  ;;  %s29_s13 = int_to_ptr.vmem [resolvable:$true] %s28_s13 }
   0x4   :  { %s1284_s14 = scalar_lea.vmem %s29_s13, 8192  ;;  %p1289_p1 = scmp.lt.s32.totalorder %s29_s13, %s29_s13 }
   0x5   :  { %p1285_p0 = scmp.ne.s32.totalorder %s29_s13, %s1284_s14  ;;  %p1290_p2 = scmp.lt.s32.totalorder %s1284_s14, %s1284_s14 }
   0x7   :  { %p1291_p3 = por %p1290_p2, %p1289_p1 }
   0x9   :  { %p1292_p4 = pnand %p1291_p3, %p1285_p0 }
   0xb   :  { %1295 = shalt.err (!%p1292_p4)
}
   0xc   :  { %s1363_s15 = smov 512   ;;  %s1364_s16 = smov 32  }
   0xd   :  { %34 = dma.hbm_to_vmem [thread:$0]  %s1430_s1, 8192, %s29_s13, [#allocation6], %s1363_s15, %s1363_s15, %s1364_s16  }
   0xe   :  { %s1365_s19 = smov [#allocation2]  }
   0xf   :  { %s16_s20 = sshll.u32 %s1365_s19, 4  ;;  %s17_s20 = int_to_ptr.vmem [resolvable:$true] %s16_s20 }
  0x10   :  { %s1304_s21 = scalar_lea.vmem %s17_s20, 256  ;;  %p1309_p6 = scmp.lt.s32.totalorder %s17_s20, %s17_s20 }
  0x11   :  { %p1305_p5 = scmp.ne.s32.totalorder %s17_s20, %s1304_s21  ;;  %p1310_p7 = scmp.lt.s32.totalorder %s1304_s21, %s1304_s21 }
  0x13   :  { %p1311_p8 = por %p1310_p7, %p1309_p6 }
  0x15   :  { %p1312_p9 = pnand %p1311_p8, %p1305_p5 }
  0x17   :  { %1315 = shalt.err (!%p1312_p9)
}
  0x18   :  { %s1366_s22 = smov 128   ;;  %s1367_s23 = smov 8  }
  0x19   :  { %22 = dma.hbm_to_vmem [thread:$0]  %s1429_s0, 256, %s17_s20, [#allocation3], %s1366_s22, %s1366_s22, %s1367_s23  }
  0x1a   :  { %s1368_s1 = smov [#allocation7]  }
  0x1b   :  { %s40_s26 = sshll.u32 %s1368_s1, 4  ;;  %s41_s26 = int_to_ptr.vmem [resolvable:$true] %s40_s26 }
  0x1c   :  { %s1324_s27 = scalar_lea.vmem %s41_s26, 4096  ;;  %p1329_p11 = scmp.lt.s32.totalorder %s41_s26, %s41_s26 }
  0x1d   :  { %p1325_p10 = scmp.ne.s32.totalorder %s41_s26, %s1324_s27  ;;  %p1330_p12 = scmp.lt.s32.totalorder %s1324_s27, %s1324_s27 }
  0x1f   :  { %p1331_p13 = por %p1330_p12, %p1329_p11 }
  0x21   :  { %p1332_p0 = pnand %p1331_p13, %p1325_p10 }
  0x23   :  { %1335 = shalt.err (!%p1332_p0)
}
  0x24   :  { %s1369_s28 = smov 64   ;;  %s1370_s29 = smov 4  }
  0x25   :  { %46 = dma.hbm_to_vmem [thread:$0]  %s1431_s2, 4096, %s41_s26, [#allocation6], %s1369_s28, %s1369_s28, %s1370_s29  }
  0x26   :  { %1356 = dma.done.wait [#allocation3], 256  }
  0x27   :  { %1357 = vsyncadd [#allocation3], 4294967040 }
  0x28   :  { %1358 = dma.done.wait [#allocation6], 12288  }
  0x29   :  { %1359 = vsyncadd [#allocation6], 4294955008  ;;  %v1371_v0 = vmov 0   ;;  %v122_v1 = vld [vmem:[#allocation5 + $0x1c0] sm:$0xff]  ;;  %v123_v3 = vld [vmem:[#allocation5 + $0x1c8] sm:$0xff]  ;;  %s1372_s0 = smov [#allocation8]  }
  0x2a   :  { %482 = vmatprep.mubr.bf16.mxu0 %v1371_v0  ;;  %525 = vmatprep.mubr.bf16.mxu1 %v1371_v0  ;;  %v126_v2 = vld [vmem:[#allocation5 + $0x1e0] sm:$0xff]  ;;  %v127_v5 = vld [vmem:[#allocation5 + $0x1e8] sm:$0xff]  ;;  %v124_v60 = vld [vmem:[#allocation5 + $0x1d0] sm:$0xff]  ;;  %s1039_s2 = sshll.u32 %s1372_s0, 4  ;;  %s1040_s2 = int_to_ptr.vmem [resolvable:$true] %s1039_s2 }
  0x2b   :  { %v1109_v4 = vcombine.high %v122_v1, %v126_v2  ;;  %v1108_v6 = vcombine.low %v122_v1, %v126_v2  ;;  %v114_v7 = vld [vmem:[#allocation5 + $0x180] sm:$0xff]  ;;  %v1111_v9 = vcombine.high %v123_v3, %v127_v5  ;;  %v1110_v10 = vcombine.low %v123_v3, %v127_v5  ;;  %v115_v12 = vld [vmem:[#allocation5 + $0x188] sm:$0xff]  ;;  %v128_v61 = vld [vmem:[#allocation5 + $0x1f0] sm:$0xff]  ;;  %s1336_s5 = scalar_lea.vmem %s1040_s2, 256  ;;  %p1341_p2 = scmp.lt.s32.totalorder %s1040_s2, %s1040_s2 }
  0x2c   :  { %v118_v8 = vld [vmem:[#allocation5 + $0x1a0] sm:$0xff]  ;;  %v119_v13 = vld [vmem:[#allocation5 + $0x1a8] sm:$0xff]  ;;  %v125_v1 = vld [vmem:[#allocation5 + $0x1d8] sm:$0xff]  ;;  %p1337_p1 = scmp.ne.s32.totalorder %s1040_s2, %s1336_s5  ;;  %p1342_p3 = scmp.lt.s32.totalorder %s1336_s5, %s1336_s5 }
  0x2d   :  { %v1101_v11 = vcombine.high %v114_v7, %v118_v8  ;;  %v106_v14 = vld [vmem:[#allocation5 + $0x140] sm:$0xff]  ;;  %450 = vmatprep.subr.bf16.mxu0 %v1109_v4  ;;  %v1103_v15 = vcombine.high %v115_v12, %v119_v13  ;;  %v107_v17 = vld [vmem:[#allocation5 + $0x148] sm:$0xff]  ;;  %493 = vmatprep.subr.bf16.mxu1 %v1111_v9  ;;  %v1100_v19 = vcombine.low %v114_v7, %v118_v8  ;;  %v129_v2 = vld [vmem:[#allocation5 + $0x1f8] sm:$0xff] }
  0x2e   :  { %v110_v16 = vld [vmem:[#allocation5 + $0x160] sm:$0xff]  ;;  %v111_v18 = vld [vmem:[#allocation5 + $0x168] sm:$0xff]  ;;  %451 = vmatpush1.bf16.msra.mxu0 %v1108_v6  ;;  %494 = vmatpush1.bf16.msra.mxu1 %v1110_v10  ;;  %v1102_v20 = vcombine.low %v115_v12, %v119_v13  ;;  %v63_v4 = vld [vmem:[#allocation2] sm:$0xff]  ;;  %v1113_v10 = vcombine.high %v124_v60, %v128_v61  ;;  %v1115_v13 = vcombine.high %v125_v1, %v129_v2  ;;  %p1343_p4 = por %p1342_p3, %p1341_p2 }
  0x2f   :  { %452 = vmatprep.subr.bf16.mxu0 %v1101_v11  ;;  %v1093_v21 = vcombine.high %v106_v14, %v110_v16  ;;  %495 = vmatprep.subr.bf16.mxu1 %v1103_v15  ;;  %v1095_v22 = vcombine.high %v107_v17, %v111_v18  ;;  %v98_v23 = vld [vmem:[#allocation5 + $0x100] sm:$0xff]  ;;  %v99_v25 = vld [vmem:[#allocation5 + $0x108] sm:$0xff]  ;;  %v1092_v27 = vcombine.low %v106_v14, %v110_v16  ;;  %v64_v5 = vld [vmem:[#allocation2 + $0x8] sm:$0xff] }
  0x30   :  { %v102_v24 = vld [vmem:[#allocation5 + $0x120] sm:$0xff]  ;;  %v103_v26 = vld [vmem:[#allocation5 + $0x128] sm:$0xff]  ;;  %v1094_v28 = vcombine.low %v107_v17, %v111_v18  ;;  %v116_v7 = vld [vmem:[#allocation5 + $0x190] sm:$0xff]  ;;  %v1407_v14 = vpack.c.bf16 %v64_v5, %v63_v4  ;;  %v1112_v15 = vcombine.low %v124_v60, %v128_v61  ;;  %v1114_v18 = vcombine.low %v125_v1, %v129_v2  ;;  %p1344_p5 = pnand %p1343_p4, %p1337_p1 }
  0x31   :  { %v1085_v29 = vcombine.high %v98_v23, %v102_v24  ;;  %v1087_v30 = vcombine.high %v99_v25, %v103_v26  ;;  %v90_v31 = vld [vmem:[#allocation5 + $0xc0] sm:$0xff]  ;;  %v91_v33 = vld [vmem:[#allocation5 + $0xc8] sm:$0xff]  ;;  %v1084_v35 = vcombine.low %v98_v23, %v102_v24  ;;  %v1086_v36 = vcombine.low %v99_v25, %v103_v26  ;;  %v120_v8 = vld [vmem:[#allocation5 + $0x1b0] sm:$0xff] }
  0x32   :  { %453 = vmatpush1.bf16.msra.mxu0 %v1100_v19  ;;  %496 = vmatpush1.bf16.msra.mxu1 %v1102_v20  ;;  %v94_v32 = vld [vmem:[#allocation5 + $0xe0] sm:$0xff]  ;;  %v95_v34 = vld [vmem:[#allocation5 + $0xe8] sm:$0xff]  ;;  %v117_v11 = vld [vmem:[#allocation5 + $0x198] sm:$0xff]  ;;  %v1105_v19 = vcombine.high %v116_v7, %v120_v8  ;;  %v1104_v23 = vcombine.low %v116_v7, %v120_v8 }
  0x33   :  { %454 = vmatprep.subr.bf16.mxu0 %v1093_v21  ;;  %497 = vmatprep.subr.bf16.mxu1 %v1095_v22  ;;  %v1077_v37 = vcombine.high %v90_v31, %v94_v32  ;;  %v1079_v38 = vcombine.high %v91_v33, %v95_v34  ;;  %v82_v39 = vld [vmem:[#allocation5 + $0x80] sm:$0xff]  ;;  %v83_v41 = vld [vmem:[#allocation5 + $0x88] sm:$0xff]  ;;  %v1076_v43 = vcombine.low %v90_v31, %v94_v32  ;;  %v121_v12 = vld [vmem:[#allocation5 + $0x1b8] sm:$0xff] }
  0x34   :  { %v86_v40 = vld [vmem:[#allocation5 + $0xa0] sm:$0xff]  ;;  %v87_v42 = vld [vmem:[#allocation5 + $0xa8] sm:$0xff]  ;;  %v1078_v44 = vcombine.low %v91_v33, %v95_v34  ;;  %v108_v16 = vld [vmem:[#allocation5 + $0x150] sm:$0xff]  ;;  %v1107_v22 = vcombine.high %v117_v11, %v121_v12  ;;  %v1106_v26 = vcombine.low %v117_v11, %v121_v12 }
  0x35   :  { %v1069_v45 = vcombine.high %v82_v39, %v86_v40  ;;  %v1071_v46 = vcombine.high %v83_v41, %v87_v42  ;;  %v74_v47 = vld [vmem:[#allocation5 + $0x40] sm:$0xff]  ;;  %v75_v49 = vld [vmem:[#allocation5 + $0x48] sm:$0xff]  ;;  %v1068_v51 = vcombine.low %v82_v39, %v86_v40  ;;  %v1070_v53 = vcombine.low %v83_v41, %v87_v42  ;;  %v112_v17 = vld [vmem:[#allocation5 + $0x170] sm:$0xff] }
  0x36   :  { %455 = vmatpush1.bf16.msra.mxu0 %v1092_v27  ;;  %498 = vmatpush1.bf16.msra.mxu1 %v1094_v28  ;;  %v78_v48 = vld [vmem:[#allocation5 + $0x60] sm:$0xff]  ;;  %v79_v50 = vld [vmem:[#allocation5 + $0x68] sm:$0xff]  ;;  %v109_v20 = vld [vmem:[#allocation5 + $0x158] sm:$0xff]  ;;  %v1097_v27 = vcombine.high %v108_v16, %v112_v17  ;;  %v1096_v31 = vcombine.low %v108_v16, %v112_v17 }
  0x37   :  { %456 = vmatprep.subr.bf16.mxu0 %v1085_v29  ;;  %499 = vmatprep.subr.bf16.mxu1 %v1087_v30  ;;  %v66_v52 = vld [vmem:[#allocation5] sm:$0xff]  ;;  %v1061_v54 = vcombine.high %v74_v47, %v78_v48  ;;  %v67_v56 = vld [vmem:[#allocation5 + $0x8] sm:$0xff]  ;;  %v1063_v58 = vcombine.high %v75_v49, %v79_v50  ;;  %v1060_v59 = vcombine.low %v74_v47, %v78_v48  ;;  %v113_v21 = vld [vmem:[#allocation5 + $0x178] sm:$0xff] }
  0x38   :  { %v70_v55 = vld [vmem:[#allocation5 + $0x20] sm:$0xff]  ;;  %v71_v57 = vld [vmem:[#allocation5 + $0x28] sm:$0xff]  ;;  %v1062_v62 = vcombine.low %v75_v49, %v79_v50  ;;  %v100_v24 = vld [vmem:[#allocation5 + $0x110] sm:$0xff]  ;;  %v1099_v30 = vcombine.high %v109_v20, %v113_v21  ;;  %v1098_v34 = vcombine.low %v109_v20, %v113_v21 }
  0x39   :  { %v1053_v63 = vcombine.high %v66_v52, %v70_v55  ;;  %v1055_v3 = vcombine.high %v67_v56, %v71_v57  ;;  %v1052_v6 = vcombine.low %v66_v52, %v70_v55  ;;  %v1054_v9 = vcombine.low %v67_v56, %v71_v57  ;;  %v104_v25 = vld [vmem:[#allocation5 + $0x130] sm:$0xff]  ;;  %v101_v28 = vld [vmem:[#allocation5 + $0x118] sm:$0xff]  ;;  %v1222_v16 = vld [vmem:[#allocation7 + $0x28] sm:$0xff]  }
  0x3a   :  { %457 = vmatpush1.bf16.msra.mxu0 %v1084_v35  ;;  %500 = vmatpush1.bf16.msra.mxu1 %v1086_v36  ;;  %v105_v29 = vld [vmem:[#allocation5 + $0x138] sm:$0xff]  ;;  %v92_v32 = vld [vmem:[#allocation5 + $0xd0] sm:$0xff]  ;;  %v1089_v35 = vcombine.high %v100_v24, %v104_v25  ;;  %v1088_v39 = vcombine.low %v100_v24, %v104_v25  ;;  %v1224_v17 = vld [vmem:[#allocation7 + $0x60] sm:$0xff]  }
  0x3b   :  { %458 = vmatprep.subr.bf16.mxu0 %v1077_v37  ;;  %501 = vmatprep.subr.bf16.mxu1 %v1079_v38  ;;  %v96_v33 = vld [vmem:[#allocation5 + $0xf0] sm:$0xff]  ;;  %v1091_v36 = vcombine.high %v101_v28, %v105_v29  ;;  %v93_v37 = vld [vmem:[#allocation5 + $0xd8] sm:$0xff]  ;;  %v1090_v40 = vcombine.low %v101_v28, %v105_v29  ;;  %v1227_v20 = vld [vmem:[#allocation7 + $0xa0] sm:$0xff]  }
  0x3c   :  { %v97_v38 = vld [vmem:[#allocation5 + $0xf8] sm:$0xff]  ;;  %v1081_v41 = vcombine.high %v92_v32, %v96_v33  ;;  %v84_v42 = vld [vmem:[#allocation5 + $0x90] sm:$0xff]  ;;  %v1236_v29 = vld [vmem:[#allocation7 + $0x48] sm:$0xff]  }
  0x3d   :  { %v1082_v47 = vcombine.low %v93_v37, %v97_v38  ;;  %v76_v50 = vld [vmem:[#allocation5 + $0x50] sm:$0xff]  ;;  %v77_v52 = vld [vmem:[#allocation5 + $0x58] sm:$0xff] }
  0x3e   :  { %459 = vmatpush1.bf16.msra.mxu0 %v1076_v43  ;;  %502 = vmatpush1.bf16.msra.mxu1 %v1078_v44  ;;  %v88_v43 = vld [vmem:[#allocation5 + $0xb0] sm:$0xff]  ;;  %v85_v44 = vld [vmem:[#allocation5 + $0x98] sm:$0xff] }
  0x3f   :  { %460 = vmatprep.subr.bf16.mxu0 %v1069_v45  ;;  %503 = vmatprep.subr.bf16.mxu1 %v1071_v46  ;;  %v89_v45 = vld [vmem:[#allocation5 + $0xb8] sm:$0xff]  ;;  %v1080_v46 = vcombine.low %v92_v32, %v96_v33  ;;  %v1073_v48 = vcombine.high %v84_v42, %v88_v43  ;;  %v1218_v11 = vld [vmem:[#allocation7 + $0x30] sm:$0xff]   ;;  %v1239_v32 = vld [vmem:[#allocation7 + $0x88] sm:$0xff]  }
  0x40   :  { %v1075_v49 = vcombine.high %v85_v44, %v89_v45  ;;  %v1074_v55 = vcombine.low %v85_v44, %v89_v45  ;;  %v69_v60 = vld [vmem:[#allocation5 + $0x18] sm:$0xff]  ;;  %v1219_v12 = vld [vmem:[#allocation7 + $0xb0] sm:$0xff]   ;;  %v1240_v33 = vld [vmem:[#allocation7 + $0x40] sm:$0xff]  }
  0x41   :  { %v73_v61 = vld [vmem:[#allocation5 + $0x38] sm:$0xff]  ;;  %v1232_v25 = vld [vmem:[#allocation7 + $0x50] sm:$0xff]  }
  0x42   :  { %461 = vmatpush1.bf16.msra.mxu0 %v1068_v51  ;;  %504 = vmatpush1.bf16.msra.mxu1 %v1070_v53  ;;  %v80_v51 = vld [vmem:[#allocation5 + $0x70] sm:$0xff]  ;;  %v81_v53 = vld [vmem:[#allocation5 + $0x78] sm:$0xff]  ;;  %v1059_v2 = vcombine.high %v69_v60, %v73_v61  ;;  %v1058_v4 = vcombine.low %v69_v60, %v73_v61 }
  0x43   :  { %462 = vmatprep.subr.bf16.mxu0 %v1061_v54  ;;  %505 = vmatprep.subr.bf16.mxu1 %v1063_v58  ;;  %v1072_v54 = vcombine.low %v84_v42, %v88_v43  ;;  %v1065_v56 = vcombine.high %v76_v50, %v80_v51  ;;  %v1067_v57 = vcombine.high %v77_v52, %v81_v53  ;;  %v68_v58 = vld [vmem:[#allocation5 + $0x10] sm:$0xff]  ;;  %v1212_v5 = vld [vmem:[#allocation7 + $0x78] sm:$0xff]  }
  0x44   :  { %v1214_v7 = vld [vmem:[#allocation7 + $0x38] sm:$0xff]   ;;  %v1235_v28 = vld [vmem:[#allocation7 + $0x90] sm:$0xff]  }
  0x45   :  { %v1215_v8 = vld [vmem:[#allocation7 + $0xb8] sm:$0xff]  }
  0x46   :  { %463 = vmatpush1.bf16.msra.mxu0 %v1060_v59  ;;  %506 = vmatpush1.bf16.msra.mxu1 %v1062_v62  ;;  %v72_v59 = vld [vmem:[#allocation5 + $0x30] sm:$0xff]  ;;  %v1064_v62 = vcombine.low %v76_v50, %v80_v51  ;;  %v1228_v21 = vld [vmem:[#allocation7 + $0x58] sm:$0xff]  }
  0x47   :  { %464 = vmatprep.subr.bf16.mxu0 %v1053_v63  ;;  %507 = vmatprep.subr.bf16.mxu1 %v1055_v3  ;;  %v1066_v63 = vcombine.low %v77_v52, %v81_v53  ;;  %v1057_v1 = vcombine.high %v68_v58, %v72_v59  ;;  %v1056_v3 = vcombine.low %v68_v58, %v72_v59  ;;  %v1231_v24 = vld [vmem:[#allocation7 + $0x98] sm:$0xff]  }
  0x4a   :  { %465 = vmatpush1.bf16.msra.mxu0 %v1052_v6  ;;  %508 = vmatpush1.bf16.msra.mxu1 %v1054_v9  ;;  %v1213_v6 = vld [vmem:[#allocation7 + $0xf8] sm:$0xff]   ;;  %v1216_v9 = vld [vmem:[#allocation7 + $0x70] sm:$0xff]  }
  0x4b   :  { %536 = vmatprep.subr.bf16.mxu0 %v1113_v10  ;;  %579 = vmatprep.subr.bf16.mxu1 %v1115_v13  ;;  %v1217_v10 = vld [vmem:[#allocation7 + $0xf0] sm:$0xff]   ;;  %v1220_v13 = vld [vmem:[#allocation7 + $0x68] sm:$0xff]  }
  0x4d   :  { %483 = vmatmul.mubr.bf16.vlgmr.msra.gmra.mxu0 %v1407_v14  ;;  %526 = vmatmul.mubr.bf16.vlgmr.msra.gmra.mxu1 %v1407_v14 }
  0x4e   :  { %537 = vmatpush1.bf16.msra.mxu0 %v1112_v15  ;;  %580 = vmatpush1.bf16.msra.mxu1 %v1114_v18  ;;  %v1221_v15 = vld [vmem:[#allocation7 + $0xe8] sm:$0xff]   ;;  %v1225_v18 = vld [vmem:[#allocation7 + $0xe0] sm:$0xff]  }
  0x4f   :  { %538 = vmatprep.subr.bf16.mxu0 %v1105_v19  ;;  %581 = vmatprep.subr.bf16.mxu1 %v1107_v22  ;;  %v1226_v19 = vld [vmem:[#allocation7 + $0x20] sm:$0xff]   ;;  %v1229_v22 = vld [vmem:[#allocation7 + $0xd8] sm:$0xff]  }
  0x50   :  { %568 = vmatprep.mubr.bf16.mxu0 %v1371_v0  ;;  %611 = vmatprep.mubr.bf16.mxu1 %v1371_v0  ;;  %v1083_v0 = vcombine.high %v93_v37, %v97_v38 }
  0x52   :  { %539 = vmatpush1.bf16.msra.mxu0 %v1104_v23  ;;  %582 = vmatpush1.bf16.msra.mxu1 %v1106_v26  ;;  %v1230_v23 = vld [vmem:[#allocation7 + $0x18] sm:$0xff]   ;;  %v1233_v26 = vld [vmem:[#allocation7 + $0xd0] sm:$0xff]  }
  0x53   :  { %540 = vmatprep.subr.bf16.mxu0 %v1097_v27  ;;  %583 = vmatprep.subr.bf16.mxu1 %v1099_v30  ;;  %v1234_v27 = vld [vmem:[#allocation7 + $0x10] sm:$0xff]   ;;  %v1237_v30 = vld [vmem:[#allocation7 + $0xc8] sm:$0xff]  }
  0x56   :  { %541 = vmatpush1.bf16.msra.mxu0 %v1096_v31  ;;  %584 = vmatpush1.bf16.msra.mxu1 %v1098_v34  ;;  %v1238_v31 = vld [vmem:[#allocation7 + $0x8] sm:$0xff]   ;;  %v1241_v34 = vld [vmem:[#allocation7 + $0xc0] sm:$0xff]  }
  0x57   :  { %542 = vmatprep.subr.bf16.mxu0 %v1089_v35  ;;  %585 = vmatprep.subr.bf16.mxu1 %v1091_v36  ;;  %v1242_v35 = vld [vmem:[#allocation7] sm:$0xff]  }
  0x58   :  { %v1243_v36 = vld [vmem:[#allocation7 + $0x80] sm:$0xff]  }
  0x5a   :  { %543 = vmatpush1.bf16.msra.mxu0 %v1088_v39  ;;  %586 = vmatpush1.bf16.msra.mxu1 %v1090_v40 }
  0x5b   :  { %544 = vmatprep.subr.bf16.mxu0 %v1081_v41  ;;  %587 = vmatprep.subr.bf16.mxu1 %v1083_v0 }
  0x5e   :  { %545 = vmatpush1.bf16.msra.mxu0 %v1080_v46  ;;  %588 = vmatpush1.bf16.msra.mxu1 %v1082_v47 }
  0x5f   :  { %546 = vmatprep.subr.bf16.mxu0 %v1073_v48  ;;  %589 = vmatprep.subr.bf16.mxu1 %v1075_v49 }
  0x62   :  { %547 = vmatpush1.bf16.msra.mxu0 %v1072_v54  ;;  %590 = vmatpush1.bf16.msra.mxu1 %v1074_v55 }
  0x63   :  { %548 = vmatprep.subr.bf16.mxu0 %v1065_v56  ;;  %591 = vmatprep.subr.bf16.mxu1 %v1067_v57 }
  0x66   :  { %549 = vmatpush1.bf16.msra.mxu0 %v1064_v62  ;;  %592 = vmatpush1.bf16.msra.mxu1 %v1066_v63 }
  0x67   :  { %550 = vmatprep.subr.bf16.mxu0 %v1057_v1  ;;  %593 = vmatprep.subr.bf16.mxu1 %v1059_v2 }
  0x6a   :  { %551 = vmatpush1.bf16.msra.mxu0 %v1056_v3  ;;  %594 = vmatpush1.bf16.msra.mxu1 %v1058_v4 }
  0x6b   :  { %1156 = vmatprep.subr.bf16.mxu0 %v1212_v5  ;;  %1178 = vmatprep.subr.bf16.mxu1 %v1213_v6 }
  0x6d   :  { %569 = vmatmul.mubr.bf16.vlgmr.msra.gmra.mxu0 %v1407_v14  ;;  %612 = vmatmul.mubr.bf16.vlgmr.msra.gmra.mxu1 %v1407_v14  ;;  %v1223_v14 = vld [vmem:[#allocation7 + $0xa8] sm:$0xff]  }
  0x6e   :  { %1157 = vmatpush3.bf16.msra.mxu0 %v1214_v7  ;;  %1179 = vmatpush3.bf16.msra.mxu1 %v1215_v8 }
  0x6f   :  { %1158 = vmatprep.subr.bf16.mxu0 %v1216_v9  ;;  %1180 = vmatprep.subr.bf16.mxu1 %v1217_v10 }
  0x72   :  { %1159 = vmatpush3.bf16.msra.mxu0 %v1218_v11  ;;  %1181 = vmatpush3.bf16.msra.mxu1 %v1219_v12 }
  0x73   :  { %1160 = vmatprep.subr.bf16.mxu0 %v1220_v13  ;;  %1182 = vmatprep.subr.bf16.mxu1 %v1221_v15 }
  0x76   :  { %1161 = vmatpush3.bf16.msra.mxu0 %v1222_v16  ;;  %1183 = vmatpush3.bf16.msra.mxu1 %v1223_v14 }
  0x77   :  { %1162 = vmatprep.subr.bf16.mxu0 %v1224_v17  ;;  %1184 = vmatprep.subr.bf16.mxu1 %v1225_v18 }
  0x7a   :  { %1163 = vmatpush3.bf16.msra.mxu0 %v1226_v19  ;;  %1185 = vmatpush3.bf16.msra.mxu1 %v1227_v20 }
  0x7b   :  { %1164 = vmatprep.subr.bf16.mxu0 %v1228_v21  ;;  %1186 = vmatprep.subr.bf16.mxu1 %v1229_v22 }
  0x7e   :  { %1165 = vmatpush3.bf16.msra.mxu0 %v1230_v23  ;;  %1187 = vmatpush3.bf16.msra.mxu1 %v1231_v24 }
  0x7f   :  { %1166 = vmatprep.subr.bf16.mxu0 %v1232_v25  ;;  %1188 = vmatprep.subr.bf16.mxu1 %v1233_v26 }
  0x82   :  { %1167 = vmatpush3.bf16.msra.mxu0 %v1234_v27  ;;  %1189 = vmatpush3.bf16.msra.mxu1 %v1235_v28 }
  0x83   :  { %1168 = vmatprep.subr.bf16.mxu0 %v1236_v29  ;;  %1190 = vmatprep.subr.bf16.mxu1 %v1237_v30 }
  0x86   :  { %1169 = vmatpush3.bf16.msra.mxu0 %v1238_v31  ;;  %1191 = vmatpush3.bf16.msra.mxu1 %v1239_v32 }
  0x87   :  { %1170 = vmatprep.subr.bf16.mxu0 %v1240_v33  ;;  %1192 = vmatprep.subr.bf16.mxu1 %v1241_v34 }
  0x8a   :  { %1171 = vmatpush3.bf16.msra.mxu0 %v1242_v35  ;;  %1193 = vmatpush3.bf16.msra.mxu1 %v1243_v36 }
 0x10d   :  { %v1415_v37 = vpop.f32.mrf.mxu0  ;;  %v1418_v39 = vpop.f32.mrf.mxu1 }
 0x10e   :  { %v1116_v38 = vmul.f32 -1.442695, %v1415_v37  ;;  %v1118_v40 = vmul.f32 -1.442695, %v1418_v39 }
 0x10f   :  { %v486_v41 = vpop.f32.mrf.mxu0  ;;  %v529_v42 = vpop.f32.mrf.mxu1 }
 0x110   :  { %1244 = vpow2.f32 %v1116_v38  ;;  %v1117_v0 = vmul.f32 -1.442695, %v486_v41  ;;  %v1119_v43 = vmul.f32 -1.442695, %v529_v42 }
 0x111   :  { %1246 = vpow2.f32 %v1118_v40  ;;  %v488_v44 = vpop.f32.mrf.mxu0  ;;  %v531_v46 = vpop.f32.mrf.mxu1 }
 0x112   :  { %1248 = vpow2.f32 %v1117_v0  ;;  %v1120_v45 = vmul.f32 -1.442695, %v488_v44  ;;  %v1122_v47 = vmul.f32 -1.442695, %v531_v46 }
 0x113   :  { %1250 = vpow2.f32 %v1119_v43  ;;  %v490_v48 = vpop.f32.mrf.mxu0  ;;  %v533_v50 = vpop.f32.mrf.mxu1 }
 0x114   :  { %1252 = vpow2.f32 %v1120_v45  ;;  %v1121_v49 = vmul.f32 -1.442695, %v490_v48  ;;  %v1123_v51 = vmul.f32 -1.442695, %v533_v50 }
 0x115   :  { %1254 = vpow2.f32 %v1122_v47 }
 0x116   :  { %1256 = vpow2.f32 %v1121_v49 }
 0x117   :  { %1258 = vpow2.f32 %v1123_v51 }
 0x11d   :  { %v1245_v52 = vpop.eup %1244 }
 0x11e   :  { %v1247_v53 = vpop.eup %1246  ;;  %v646_v54 = vadd.f32 1.0, %v1245_v52 }
 0x11f   :  { %v1249_v55 = vpop.eup %1248  ;;  %v648_v56 = vadd.f32 1.0, %v1247_v53 }
 0x120   :  { %v1251_v57 = vpop.eup %1250  ;;  %1260 = vrcp.f32 %v646_v54  ;;  %v647_v58 = vadd.f32 1.0, %v1249_v55 }
 0x121   :  { %v1253_v59 = vpop.eup %1252  ;;  %1262 = vrcp.f32 %v648_v56  ;;  %v649_v60 = vadd.f32 1.0, %v1251_v57 }
 0x122   :  { %v1255_v61 = vpop.eup %1254  ;;  %1264 = vrcp.f32 %v647_v58  ;;  %v650_v62 = vadd.f32 1.0, %v1253_v59 }
 0x123   :  { %v1257_v63 = vpop.eup %1256  ;;  %1266 = vrcp.f32 %v649_v60  ;;  %v652_v1 = vadd.f32 1.0, %v1255_v61 }
 0x124   :  { %v1259_v2 = vpop.eup %1258  ;;  %1268 = vrcp.f32 %v650_v62  ;;  %v651_v3 = vadd.f32 1.0, %v1257_v63 }
 0x125   :  { %1270 = vrcp.f32 %v652_v1  ;;  %v653_v4 = vadd.f32 1.0, %v1259_v2 }
 0x126   :  { %1272 = vrcp.f32 %v651_v3 }
 0x127   :  { %1274 = vrcp.f32 %v653_v4 }
 0x12d   :  { %v1261_v5 = vpop.eup %1260  ;;  %v570_v6 = vpop.f32.mrf.mxu0 }
 0x12e   :  { %v1263_v7 = vpop.eup %1262  ;;  %v613_v8 = vpop.f32.mrf.mxu1  ;;  %v670_v20 = vmul.f32 %v1261_v5, %v1415_v37 }
 0x12f   :  { %v1265_v9 = vpop.eup %1264  ;;  %v572_v10 = vpop.f32.mrf.mxu0  ;;  %v672_v24 = vmul.f32 %v1263_v7, %v1418_v39 }
 0x130   :  { %v1267_v11 = vpop.eup %1266  ;;  %v615_v12 = vpop.f32.mrf.mxu1  ;;  %v671_v14 = vmul.f32 %v1265_v9, %v486_v41  ;;  %v678_v33 = vmul.f32 %v670_v20, %v570_v6 }
 0x131   :  { %v1269_v13 = vpop.eup %1268  ;;  %v574_v15 = vpop.f32.mrf.mxu0  ;;  %v673_v21 = vmul.f32 %v1267_v11, %v529_v42  ;;  %v680_v36 = vmul.f32 %v672_v24, %v613_v8 }
 0x132   :  { %v1271_v16 = vpop.eup %1270  ;;  %v674_v17 = vmul.f32 %v1269_v13, %v488_v44  ;;  %v617_v18 = vpop.f32.mrf.mxu1  ;;  %v679_v29 = vmul.f32 %v671_v14, %v572_v10 }
 0x133   :  { %v1273_v19 = vpop.eup %1272  ;;  %v676_v22 = vmul.f32 %v1271_v16, %v531_v46  ;;  %v576_v28 = vpop.f32.mrf.mxu0  ;;  %v681_v34 = vmul.f32 %v673_v21, %v615_v12 }
 0x134   :  { %v1275_v23 = vpop.eup %1274  ;;  %v675_v25 = vmul.f32 %v1273_v19, %v490_v48  ;;  %v682_v27 = vmul.f32 %v674_v17, %v574_v15  ;;  %v619_v32 = vpop.f32.mrf.mxu1 }
 0x135   :  { %v677_v26 = vmul.f32 %v1275_v23, %v533_v50  ;;  %v684_v30 = vmul.f32 %v676_v22, %v617_v18 }
 0x136   :  { %v683_v31 = vmul.f32 %v675_v25, %v576_v28  ;;  %v688_v40 = vpack.c.bf16 %v682_v27, %v678_v33 }
 0x137   :  { %v685_v35 = vmul.f32 %v677_v26, %v619_v32  ;;  %v690_v41 = vpack.c.bf16 %v684_v30, %v680_v36 }
 0x138   :  { %v689_v38 = vpack.c.bf16 %v683_v31, %v679_v29 }
 0x139   :  { %v691_v37 = vpack.c.bf16 %v685_v35, %v681_v34 }
 0x13a   :  { %980 = vmatprep.mubr.bf16.mxu0 %v689_v38 }
 0x13b   :  { %1021 = vmatprep.mubr.bf16.mxu1 %v691_v37  ;;  %981 = vmatmul.mubr.bf16.vlgmr.msra.gmra.mxu0 %v688_v40 }
 0x13c   :  { %1022 = vmatmul.mubr.bf16.vlgmr.msra.gmra.mxu1 %v690_v41 }
 0x1fb   :  { %v1172_v39 = vpop.f32.mrf.mxu0 }
 0x1fc   :  { %v1194_v0 = vpop.f32.mrf.mxu1 }
 0x1fd   :  { %v1173_v42 = vpop.f32.mrf.mxu0 }
 0x1fe   :  { %v1174_v43 = vadd.f32 %v1173_v42, %v1172_v39  ;;  %v1195_v44 = vpop.f32.mrf.mxu1 }
 0x1ff   :  { %v1196_v45 = vadd.f32 %v1195_v44, %v1194_v0  ;;  %v1175_v46 = vpop.f32.mrf.mxu0 }
 0x200   :  { %v1197_v47 = vpop.f32.mrf.mxu1 }
 0x201   :  { %v1024_v48 = vadd.f32 %v1196_v45, %v1174_v43  ;;  %v1176_v49 = vpop.f32.mrf.mxu0 }
 0x202   :  { %v1177_v50 = vadd.f32 %v1176_v49, %v1175_v46  ;;  %v1198_v51 = vpop.f32.mrf.mxu1 }
 0x203   :  { %v1199_v52 = vadd.f32 %v1198_v51, %v1197_v47  ;;  %1032 = vst [vmem:[#allocation8] sm:$0xff] %v1024_v48 }
 0x205   :  { %v1027_v53 = vadd.f32 %v1199_v52, %v1177_v50 }
 0x207   :  { %1033 = vst [vmem:[#allocation8 + $0x8] sm:$0xff] %v1027_v53 }
 0x208   :  { %1347 = shalt.err (!%p1344_p5)
}
 0x209   :  { %1045 = dma.vmem_to_hbm [thread:$0]  %s1040_s2, 256, %s1432_s3, [#allocation4], %s1366_s22, %s1366_s22, %s1367_s23  }
 0x20a   :  { %1360 = dma.done.wait [#allocation4], 256  }
 0x20b   :  { %1361 = vsyncadd [#allocation4], 4294967040 }
 0x20c   :  { %1049 = vsyncpa [#allocation3], 1 }
 0x20d   :  { %1050 = vsyncpa [#allocation6], 1 }
 0x20e   :  { %1051 = vsyncpa [#allocation4], 1 }

</bundles_post_ra>
